<compile_context>
chip_gen: v5e
topology: v5e:2x2
jax: 0.10.0
libtpu: 0.0.40
codegen_flags: <defaults>
</compile_context>

<pallas_src>
import jax
import jax.numpy as jnp
import numpy as np
from jax.experimental import pallas as pl
from jax.experimental.pallas import tpu as pltpu

NEG_SLOPE = 0.2


def _leaky(x):
    # max(x, 0.2*x) == leaky_relu(x, 0.2)
    return jnp.maximum(x, NEG_SLOPE * x)


def _round_up(n, m):
    return ((n + m - 1) // m) * m


def _dblock_kernel(x_ref, gamma_ref, beta_ref,
                   wres_ref, bres_ref,
                   w1_ref, b1_ref,
                   w2_ref, b2_ref,
                   w3_ref, b3_ref,
                   w4_ref, b4_ref,
                   o_ref):
    x = x_ref[0]          # (C_pad, L) f32, downsampled input for this batch element
    gamma = gamma_ref[0]  # (H, 1) f32
    beta = beta_ref[0]    # (H, 1) f32
    L = x.shape[-1]

    # Hoisted lane index, reused for all boundary masks.
    lane = jax.lax.broadcasted_iota(jnp.int32, (1, L), 1)

    def conv3(h, w_ref, b_ref, d):
        # h: (C, L) f32;  w_ref: (H, 3C) bf16;  b_ref: (H, 1) f32  ->  (H, L) f32
        # out[:, t] = sum_k W_k @ h[:, t + (k-1)*d]   (zero padded at the borders)
        m_lo = (lane >= d).astype(h.dtype)       # valid region of h[:, t - d]
        m_hi = (lane < L - d).astype(h.dtype)    # valid region of h[:, t + d]
        h_m = pltpu.roll(h, shift=d, axis=1) * m_lo        # h[:, t - d]
        h_p = pltpu.roll(h, shift=L - d, axis=1) * m_hi    # h[:, t + d]
        # Fuse the 3 taps into a single (H,3C)x(3C,L) MXU matmul.
        hs = jnp.concatenate([h_m, h, h_p], axis=0).astype(jnp.bfloat16)
        out = jnp.dot(w_ref[...], hs, preferred_element_type=jnp.float32)
        return out + b_ref[...]

    # Residual branch: pointwise 1x1 conv (commutes with the nearest downsample).
    residual = jnp.dot(wres_ref[...], x.astype(jnp.bfloat16),
                       preferred_element_type=jnp.float32) + bres_ref[...]

    # Main branch.
    h = _leaky(x)
    h = conv3(h, w1_ref, b1_ref, 1)
    h = gamma * h + beta
    h = _leaky(h)
    h = conv3(h, w2_ref, b2_ref, 2)
    h = _leaky(h)
    h = conv3(h, w3_ref, b3_ref, 4)
    h = _leaky(h)
    h = conv3(h, w4_ref, b4_ref, 8)

    o_ref[0] = (h + residual).astype(o_ref.dtype)


def dblock_pallas(x, gamma, beta, params, factor):
    B, C_in, T = x.shape
    assert T % factor == 0, "only exact integer downsample factors are supported"
    L = T // factor
    H = params["w_res"].shape[0]
    assert H % 8 == 0, "hidden_size must be a multiple of 8 (sublane tiling)"
    C_pad = _round_up(C_in, 8)

    # Nearest-neighbor F.interpolate with an integer factor == strided subsample.
    x_ds = x[:, :, ::factor].astype(jnp.float32)
    if C_pad != C_in:
        x_ds = jnp.pad(x_ds, ((0, 0), (0, C_pad - C_in), (0, 0)))

    def prep3(w, b, c_pad):
        # (H, C, 3) -> (H, 3*c_pad) bf16, column blocks ordered [tap0 | tap1 | tap2],
        # matching the [h(t-d); h(t); h(t+d)] activation stack built in-kernel.
        Hh, C, K = w.shape
        wt = jnp.transpose(w, (0, 2, 1))                       # (H, 3, C)
        wt = jnp.pad(wt, ((0, 0), (0, 0), (0, c_pad - C)))
        return (wt.reshape(Hh, K * c_pad).astype(jnp.bfloat16),
                b.reshape(-1, 1).astype(jnp.float32))

    wres = jnp.pad(params["w_res"][:, :, 0], ((0, 0), (0, C_pad - C_in)))
    wres = wres.astype(jnp.bfloat16)                           # (H, C_pad)
    bres = params["b_res"].reshape(H, 1).astype(jnp.float32)

    w1, b1 = prep3(params["w1"], params["b1"], C_pad)
    w2, b2 = prep3(params["w2"], params["b2"], H)
    w3, b3 = prep3(params["w3"], params["b3"], H)
    w4, b4 = prep3(params["w4"], params["b4"], H)

    gamma = gamma.astype(jnp.float32)
    beta = beta.astype(jnp.float32)

    def full_spec(a):
        nd = a.ndim
        return pl.BlockSpec(a.shape, lambda b, _nd=nd: (0,) * _nd)

    grid_spec = pltpu.PrefetchScalarGridSpec(
        num_scalar_prefetch=0,
        grid=(B,),
        in_specs=[
            pl.BlockSpec((1, C_pad, L), lambda b: (b, 0, 0)),  # x_ds
            pl.BlockSpec((1, H, 1), lambda b: (b, 0, 0)),      # gamma
            pl.BlockSpec((1, H, 1), lambda b: (b, 0, 0)),      # beta
            full_spec(wres), full_spec(bres),
            full_spec(w1), full_spec(b1),
            full_spec(w2), full_spec(b2),
            full_spec(w3), full_spec(b3),
            full_spec(w4), full_spec(b4),
        ],
        out_specs=pl.BlockSpec((1, H, L), lambda b: (b, 0, 0)),
    )

    return pl.pallas_call(
        _dblock_kernel,
        out_shape=jax.ShapeDtypeStruct((B, H, L), x.dtype),
        grid_spec=grid_spec,
        compiler_params=pltpu.CompilerParams(dimension_semantics=("parallel",)),
    )(x_ds, gamma, beta, wres, bres, w1, b1, w2, b2, w3, b3, w4, b4)


# ---------------- pure-JAX reference (for correctness check) ----------------

def _conv1d_ref(x, w, b, dilation, padding):
    out = jax.lax.conv_general_dilated(
        x, w, window_strides=(1,), padding=[(padding, padding)],
        rhs_dilation=(dilation,),
        dimension_numbers=("NCH", "OIH", "NCH"),
        precision=jax.lax.Precision.HIGHEST)
    return out + b[None, :, None]


def dblock_ref(x, gamma, beta, params, factor):
    residual = _conv1d_ref(x, params["w_res"], params["b_res"], 1, 0)
    residual = residual[:, :, ::factor]          # F.interpolate (nearest)
    h = x[:, :, ::factor]                        # F.interpolate (nearest)
    h = jnp.where(h >= 0, h, NEG_SLOPE * h)
    h = _conv1d_ref(h, params["w1"], params["b1"], 1, 1)
    h = gamma * h + beta
    for w, b, d in ((params["w2"], params["b2"], 2),
                    (params["w3"], params["b3"], 4),
                    (params["w4"], params["b4"], 8)):
        h = jnp.where(h >= 0, h, NEG_SLOPE * h)
        h = _conv1d_ref(h, w, b, d, d)
    return h + residual


# ---------------- deterministic parameter init (nn.init.orthogonal_) ----------------

def orthogonal_init(key, shape):
    rows = shape[0]
    cols = int(np.prod(shape[1:]))
    a = jax.random.normal(key, (max(rows, cols), min(rows, cols)), jnp.float32)
    q, r = jnp.linalg.qr(a)
    q = q * jnp.sign(jnp.diagonal(r))
    if rows < cols:
        q = q.T
    return q.reshape(shape).astype(jnp.float32)


if __name__ == "__main__":
    # Small but TPU-friendly shapes: L = T // factor = 128 (one full lane width).
    B, C_IN, HIDDEN, T, FACTOR = 2, 4, 32, 256, 2
    key = jax.random.PRNGKey(0)
    keys = jax.random.split(key, 8)

    params = {
        "w_res": orthogonal_init(keys[0], (HIDDEN, C_IN, 1)),
        "b_res": jnp.zeros((HIDDEN,), jnp.float32),
        "w1": orthogonal_init(keys[1], (HIDDEN, C_IN, 3)),
        "b1": jnp.zeros((HIDDEN,), jnp.float32),
        "w2": orthogonal_init(keys[2], (HIDDEN, HIDDEN, 3)),
        "b2": jnp.zeros((HIDDEN,), jnp.float32),
        "w3": orthogonal_init(keys[3], (HIDDEN, HIDDEN, 3)),
        "b3": jnp.zeros((HIDDEN,), jnp.float32),
        "w4": orthogonal_init(keys[4], (HIDDEN, HIDDEN, 3)),
        "b4": jnp.zeros((HIDDEN,), jnp.float32),
    }

    x = jax.random.normal(keys[5], (B, C_IN, T), jnp.float32)
    # FiLM conditioning: per-channel gamma/beta broadcast over time.
    gamma = jax.random.normal(keys[6], (B, HIDDEN, 1), jnp.float32)
    beta = jax.random.normal(keys[7], (B, HIDDEN, 1), jnp.float32)

    out = dblock_pallas(x, gamma, beta, params, FACTOR)
    out = jax.block_until_ready(out)

    ref = dblock_ref(x, gamma, beta, params, FACTOR)
    # Kernel uses bf16 MXU operands with f32 accumulation vs an all-f32 reference,
    # hence the slightly looser tolerance (structural errors would be O(1)).
    np.testing.assert_allclose(np.asarray(out), np.asarray(ref), rtol=5e-2, atol=5e-2)

    print("KERNEL_OK")
</pallas_src>

<mosaic_0001>
module attributes {stable_mosaic.version = 11 : i64} {
  func.func @_dblock_kernel(%arg0: i32, %arg1: memref<1x8x128xf32, #tpu.memory_space<vmem>>, %arg2: memref<1x32x1xf32, #tpu.memory_space<vmem>>, %arg3: memref<1x32x1xf32, #tpu.memory_space<vmem>>, %arg4: memref<32x8xbf16, #tpu.memory_space<vmem>>, %arg5: memref<32x1xf32, #tpu.memory_space<vmem>>, %arg6: memref<32x24xbf16, #tpu.memory_space<vmem>>, %arg7: memref<32x1xf32, #tpu.memory_space<vmem>>, %arg8: memref<32x96xbf16, #tpu.memory_space<vmem>>, %arg9: memref<32x1xf32, #tpu.memory_space<vmem>>, %arg10: memref<32x96xbf16, #tpu.memory_space<vmem>>, %arg11: memref<32x1xf32, #tpu.memory_space<vmem>>, %arg12: memref<32x96xbf16, #tpu.memory_space<vmem>>, %arg13: memref<32x1xf32, #tpu.memory_space<vmem>>, %arg14: memref<1x32x128xf32, #tpu.memory_space<vmem>>) attributes {dimension_semantics = [#tpu.dimension_semantics<parallel>], iteration_bounds = array<i64: 2>, scalar_prefetch = 0 : i64, scratch_operands = 0 : i64, tpu.core_type = #tpu.core_type<tc>, window_params = [{transform_indices = @transform_0, window_bounds = array<i64: 1, 8, 128>}, {transform_indices = @transform_1, window_bounds = array<i64: 1, 32, 1>}, {transform_indices = @transform_2, window_bounds = array<i64: 1, 32, 1>}, {pipeline_mode = #tpu.pipeline_mode<synchronous>, transform_indices = @transform_3, window_bounds = array<i64: 32, 8>}, {pipeline_mode = #tpu.pipeline_mode<synchronous>, transform_indices = @transform_4, window_bounds = array<i64: 32, 1>}, {pipeline_mode = #tpu.pipeline_mode<synchronous>, transform_indices = @transform_5, window_bounds = array<i64: 32, 24>}, {pipeline_mode = #tpu.pipeline_mode<synchronous>, transform_indices = @transform_6, window_bounds = array<i64: 32, 1>}, {pipeline_mode = #tpu.pipeline_mode<synchronous>, transform_indices = @transform_7, window_bounds = array<i64: 32, 96>}, {pipeline_mode = #tpu.pipeline_mode<synchronous>, transform_indices = @transform_8, window_bounds = array<i64: 32, 1>}, {pipeline_mode = #tpu.pipeline_mode<synchronous>, transform_indices = @transform_9, window_bounds = array<i64: 32, 96>}, {pipeline_mode = #tpu.pipeline_mode<synchronous>, transform_indices = @transform_10, window_bounds = array<i64: 32, 1>}, {pipeline_mode = #tpu.pipeline_mode<synchronous>, transform_indices = @transform_11, window_bounds = array<i64: 32, 96>}, {pipeline_mode = #tpu.pipeline_mode<synchronous>, transform_indices = @transform_12, window_bounds = array<i64: 32, 1>}, {transform_indices = @transform_13, window_bounds = array<i64: 1, 32, 128>}]} {
    %c0 = arith.constant 0 : index
    %c0_0 = arith.constant 0 : index
    %c0_1 = arith.constant 0 : index
    %0 = vector.load %arg1[%c0, %c0_0, %c0_1] : memref<1x8x128xf32, #tpu.memory_space<vmem>>, vector<1x8x128xf32>
    %1 = vector.shape_cast %0 : vector<1x8x128xf32> to vector<8x128xf32>
    %c0_2 = arith.constant 0 : index
    %c0_3 = arith.constant 0 : index
    %c0_4 = arith.constant 0 : index
    %2 = vector.load %arg2[%c0_2, %c0_3, %c0_4] : memref<1x32x1xf32, #tpu.memory_space<vmem>>, vector<1x32x1xf32>
    %3 = vector.shape_cast %2 : vector<1x32x1xf32> to vector<32x1xf32>
    %c0_5 = arith.constant 0 : index
    %c0_6 = arith.constant 0 : index
    %c0_7 = arith.constant 0 : index
    %4 = vector.load %arg3[%c0_5, %c0_6, %c0_7] : memref<1x32x1xf32, #tpu.memory_space<vmem>>, vector<1x32x1xf32>
    %5 = vector.shape_cast %4 : vector<1x32x1xf32> to vector<32x1xf32>
    %6 = tpu.iota {dimensions = array<i32: 1>} : vector<1x128xi32>
    %c0_8 = arith.constant 0 : index
    %c0_9 = arith.constant 0 : index
    %7 = vector.load %arg4[%c0_8, %c0_9] : memref<32x8xbf16, #tpu.memory_space<vmem>>, vector<32x8xbf16>
    %8 = arith.truncf %1 : vector<8x128xf32> to vector<8x128xbf16>
    %cst = arith.constant dense<0.000000e+00> : vector<32x128xf32>
    %9 = tpu.matmul %7, %8, %cst {dimension_numbers = #tpu.dot_dimension_numbers<[1], [0], [0], [1], [0, 0, 1, 1], [], []>} : vector<32x8xbf16>, vector<8x128xbf16>, vector<32x128xf32> -> vector<32x128xf32>
    %c0_10 = arith.constant 0 : index
    %c0_11 = arith.constant 0 : index
    %10 = vector.load %arg5[%c0_10, %c0_11] : memref<32x1xf32, #tpu.memory_space<vmem>>, vector<32x1xf32>
    %11 = vector.broadcast %10 : vector<32x1xf32> to vector<32x128xf32>
    %12 = arith.addf %9, %11 : vector<32x128xf32>
    %cst_12 = arith.constant 2.000000e-01 : f32
    %13 = vector.broadcast %cst_12 : f32 to vector<8x128xf32>
    %14 = arith.mulf %13, %1 : vector<8x128xf32>
    %15 = arith.maximumf %1, %14 : vector<8x128xf32>
    %c1_i32 = arith.constant 1 : i32
    %16 = vector.broadcast %c1_i32 : i32 to vector<1x128xi32>
    %17 = arith.cmpi sge, %6, %16 : vector<1x128xi32>
    %18 = arith.extui %17 : vector<1x128xi1> to vector<1x128xi32>
    %19 = arith.sitofp %18 : vector<1x128xi32> to vector<1x128xf32>
    %c127_i32 = arith.constant 127 : i32
    %20 = vector.broadcast %c127_i32 : i32 to vector<1x128xi32>
    %21 = arith.cmpi slt, %6, %20 : vector<1x128xi32>
    %22 = arith.extui %21 : vector<1x128xi1> to vector<1x128xi32>
    %23 = arith.sitofp %22 : vector<1x128xi32> to vector<1x128xf32>
    %c1_i32_13 = arith.constant 1 : i32
    %24 = tpu.dynamic_rotate %15 by %c1_i32_13 dim 1 : vector<8x128xf32>, i32 -> vector<8x128xf32>
    %25 = vector.broadcast %19 : vector<1x128xf32> to vector<8x128xf32>
    %26 = arith.mulf %24, %25 : vector<8x128xf32>
    %c127_i32_14 = arith.constant 127 : i32
    %27 = tpu.dynamic_rotate %15 by %c127_i32_14 dim 1 : vector<8x128xf32>, i32 -> vector<8x128xf32>
    %28 = vector.broadcast %23 : vector<1x128xf32> to vector<8x128xf32>
    %29 = arith.mulf %27, %28 : vector<8x128xf32>
    %30 = tpu.concatenate %26, %15, %29 in 0 : vector<8x128xf32>, vector<8x128xf32>, vector<8x128xf32> -> vector<24x128xf32>
    %31 = arith.truncf %30 : vector<24x128xf32> to vector<24x128xbf16>
    %c0_15 = arith.constant 0 : index
    %c0_16 = arith.constant 0 : index
    %32 = vector.load %arg6[%c0_15, %c0_16] : memref<32x24xbf16, #tpu.memory_space<vmem>>, vector<32x24xbf16>
    %cst_17 = arith.constant dense<0.000000e+00> : vector<32x128xf32>
    %33 = tpu.matmul %32, %31, %cst_17 {dimension_numbers = #tpu.dot_dimension_numbers<[1], [0], [0], [1], [0, 0, 1, 1], [], []>} : vector<32x24xbf16>, vector<24x128xbf16>, vector<32x128xf32> -> vector<32x128xf32>
    %c0_18 = arith.constant 0 : index
    %c0_19 = arith.constant 0 : index
    %34 = vector.load %arg7[%c0_18, %c0_19] : memref<32x1xf32, #tpu.memory_space<vmem>>, vector<32x1xf32>
    %35 = vector.broadcast %34 : vector<32x1xf32> to vector<32x128xf32>
    %36 = arith.addf %33, %35 : vector<32x128xf32>
    %37 = vector.broadcast %3 : vector<32x1xf32> to vector<32x128xf32>
    %38 = arith.mulf %37, %36 : vector<32x128xf32>
    %39 = vector.broadcast %5 : vector<32x1xf32> to vector<32x128xf32>
    %40 = arith.addf %38, %39 : vector<32x128xf32>
    %cst_20 = arith.constant 2.000000e-01 : f32
    %41 = vector.broadcast %cst_20 : f32 to vector<32x128xf32>
    %42 = arith.mulf %41, %40 : vector<32x128xf32>
    %43 = arith.maximumf %40, %42 : vector<32x128xf32>
    %c2_i32 = arith.constant 2 : i32
    %44 = vector.broadcast %c2_i32 : i32 to vector<1x128xi32>
    %45 = arith.cmpi sge, %6, %44 : vector<1x128xi32>
    %46 = arith.extui %45 : vector<1x128xi1> to vector<1x128xi32>
    %47 = arith.sitofp %46 : vector<1x128xi32> to vector<1x128xf32>
    %c126_i32 = arith.constant 126 : i32
    %48 = vector.broadcast %c126_i32 : i32 to vector<1x128xi32>
    %49 = arith.cmpi slt, %6, %48 : vector<1x128xi32>
    %50 = arith.extui %49 : vector<1x128xi1> to vector<1x128xi32>
    %51 = arith.sitofp %50 : vector<1x128xi32> to vector<1x128xf32>
    %c2_i32_21 = arith.constant 2 : i32
    %52 = tpu.dynamic_rotate %43 by %c2_i32_21 dim 1 : vector<32x128xf32>, i32 -> vector<32x128xf32>
    %53 = vector.broadcast %47 : vector<1x128xf32> to vector<32x128xf32>
    %54 = arith.mulf %52, %53 : vector<32x128xf32>
    %c126_i32_22 = arith.constant 126 : i32
    %55 = tpu.dynamic_rotate %43 by %c126_i32_22 dim 1 : vector<32x128xf32>, i32 -> vector<32x128xf32>
    %56 = vector.broadcast %51 : vector<1x128xf32> to vector<32x128xf32>
    %57 = arith.mulf %55, %56 : vector<32x128xf32>
    %58 = tpu.concatenate %54, %43, %57 in 0 : vector<32x128xf32>, vector<32x128xf32>, vector<32x128xf32> -> vector<96x128xf32>
    %59 = arith.truncf %58 : vector<96x128xf32> to vector<96x128xbf16>
    %c0_23 = arith.constant 0 : index
    %c0_24 = arith.constant 0 : index
    %60 = vector.load %arg8[%c0_23, %c0_24] : memref<32x96xbf16, #tpu.memory_space<vmem>>, vector<32x96xbf16>
    %cst_25 = arith.constant dense<0.000000e+00> : vector<32x128xf32>
    %61 = tpu.matmul %60, %59, %cst_25 {dimension_numbers = #tpu.dot_dimension_numbers<[1], [0], [0], [1], [0, 0, 1, 1], [], []>} : vector<32x96xbf16>, vector<96x128xbf16>, vector<32x128xf32> -> vector<32x128xf32>
    %c0_26 = arith.constant 0 : index
    %c0_27 = arith.constant 0 : index
    %62 = vector.load %arg9[%c0_26, %c0_27] : memref<32x1xf32, #tpu.memory_space<vmem>>, vector<32x1xf32>
    %63 = vector.broadcast %62 : vector<32x1xf32> to vector<32x128xf32>
    %64 = arith.addf %61, %63 : vector<32x128xf32>
    %cst_28 = arith.constant 2.000000e-01 : f32
    %65 = vector.broadcast %cst_28 : f32 to vector<32x128xf32>
    %66 = arith.mulf %65, %64 : vector<32x128xf32>
    %67 = arith.maximumf %64, %66 : vector<32x128xf32>
    %c4_i32 = arith.constant 4 : i32
    %68 = vector.broadcast %c4_i32 : i32 to vector<1x128xi32>
    %69 = arith.cmpi sge, %6, %68 : vector<1x128xi32>
    %70 = arith.extui %69 : vector<1x128xi1> to vector<1x128xi32>
    %71 = arith.sitofp %70 : vector<1x128xi32> to vector<1x128xf32>
    %c124_i32 = arith.constant 124 : i32
    %72 = vector.broadcast %c124_i32 : i32 to vector<1x128xi32>
    %73 = arith.cmpi slt, %6, %72 : vector<1x128xi32>
    %74 = arith.extui %73 : vector<1x128xi1> to vector<1x128xi32>
    %75 = arith.sitofp %74 : vector<1x128xi32> to vector<1x128xf32>
    %c4_i32_29 = arith.constant 4 : i32
    %76 = tpu.dynamic_rotate %67 by %c4_i32_29 dim 1 : vector<32x128xf32>, i32 -> vector<32x128xf32>
    %77 = vector.broadcast %71 : vector<1x128xf32> to vector<32x128xf32>
    %78 = arith.mulf %76, %77 : vector<32x128xf32>
    %c124_i32_30 = arith.constant 124 : i32
    %79 = tpu.dynamic_rotate %67 by %c124_i32_30 dim 1 : vector<32x128xf32>, i32 -> vector<32x128xf32>
    %80 = vector.broadcast %75 : vector<1x128xf32> to vector<32x128xf32>
    %81 = arith.mulf %79, %80 : vector<32x128xf32>
    %82 = tpu.concatenate %78, %67, %81 in 0 : vector<32x128xf32>, vector<32x128xf32>, vector<32x128xf32> -> vector<96x128xf32>
    %83 = arith.truncf %82 : vector<96x128xf32> to vector<96x128xbf16>
    %c0_31 = arith.constant 0 : index
    %c0_32 = arith.constant 0 : index
    %84 = vector.load %arg10[%c0_31, %c0_32] : memref<32x96xbf16, #tpu.memory_space<vmem>>, vector<32x96xbf16>
    %cst_33 = arith.constant dense<0.000000e+00> : vector<32x128xf32>
    %85 = tpu.matmul %84, %83, %cst_33 {dimension_numbers = #tpu.dot_dimension_numbers<[1], [0], [0], [1], [0, 0, 1, 1], [], []>} : vector<32x96xbf16>, vector<96x128xbf16>, vector<32x128xf32> -> vector<32x128xf32>
    %c0_34 = arith.constant 0 : index
    %c0_35 = arith.constant 0 : index
    %86 = vector.load %arg11[%c0_34, %c0_35] : memref<32x1xf32, #tpu.memory_space<vmem>>, vector<32x1xf32>
    %87 = vector.broadcast %86 : vector<32x1xf32> to vector<32x128xf32>
    %88 = arith.addf %85, %87 : vector<32x128xf32>
    %cst_36 = arith.constant 2.000000e-01 : f32
    %89 = vector.broadcast %cst_36 : f32 to vector<32x128xf32>
    %90 = arith.mulf %89, %88 : vector<32x128xf32>
    %91 = arith.maximumf %88, %90 : vector<32x128xf32>
    %c8_i32 = arith.constant 8 : i32
    %92 = vector.broadcast %c8_i32 : i32 to vector<1x128xi32>
    %93 = arith.cmpi sge, %6, %92 : vector<1x128xi32>
    %94 = arith.extui %93 : vector<1x128xi1> to vector<1x128xi32>
    %95 = arith.sitofp %94 : vector<1x128xi32> to vector<1x128xf32>
    %c120_i32 = arith.constant 120 : i32
    %96 = vector.broadcast %c120_i32 : i32 to vector<1x128xi32>
    %97 = arith.cmpi slt, %6, %96 : vector<1x128xi32>
    %98 = arith.extui %97 : vector<1x128xi1> to vector<1x128xi32>
    %99 = arith.sitofp %98 : vector<1x128xi32> to vector<1x128xf32>
    %c8_i32_37 = arith.constant 8 : i32
    %100 = tpu.dynamic_rotate %91 by %c8_i32_37 dim 1 : vector<32x128xf32>, i32 -> vector<32x128xf32>
    %101 = vector.broadcast %95 : vector<1x128xf32> to vector<32x128xf32>
    %102 = arith.mulf %100, %101 : vector<32x128xf32>
    %c120_i32_38 = arith.constant 120 : i32
    %103 = tpu.dynamic_rotate %91 by %c120_i32_38 dim 1 : vector<32x128xf32>, i32 -> vector<32x128xf32>
    %104 = vector.broadcast %99 : vector<1x128xf32> to vector<32x128xf32>
    %105 = arith.mulf %103, %104 : vector<32x128xf32>
    %106 = tpu.concatenate %102, %91, %105 in 0 : vector<32x128xf32>, vector<32x128xf32>, vector<32x128xf32> -> vector<96x128xf32>
    %107 = arith.truncf %106 : vector<96x128xf32> to vector<96x128xbf16>
    %c0_39 = arith.constant 0 : index
    %c0_40 = arith.constant 0 : index
    %108 = vector.load %arg12[%c0_39, %c0_40] : memref<32x96xbf16, #tpu.memory_space<vmem>>, vector<32x96xbf16>
    %cst_41 = arith.constant dense<0.000000e+00> : vector<32x128xf32>
    %109 = tpu.matmul %108, %107, %cst_41 {dimension_numbers = #tpu.dot_dimension_numbers<[1], [0], [0], [1], [0, 0, 1, 1], [], []>} : vector<32x96xbf16>, vector<96x128xbf16>, vector<32x128xf32> -> vector<32x128xf32>
    %c0_42 = arith.constant 0 : index
    %c0_43 = arith.constant 0 : index
    %110 = vector.load %arg13[%c0_42, %c0_43] : memref<32x1xf32, #tpu.memory_space<vmem>>, vector<32x1xf32>
    %111 = vector.broadcast %110 : vector<32x1xf32> to vector<32x128xf32>
    %112 = arith.addf %109, %111 : vector<32x128xf32>
    %113 = arith.addf %112, %12 : vector<32x128xf32>
    %c0_44 = arith.constant 0 : index
    %c0_45 = arith.constant 0 : index
    %c0_46 = arith.constant 0 : index
    %114 = vector.load %arg14[%c0_44, %c0_45, %c0_46] : memref<1x32x128xf32, #tpu.memory_space<vmem>>, vector<1x32x128xf32>
    %115 = vector.shape_cast %114 : vector<1x32x128xf32> to vector<32x128xf32>
    %116 = vector.shape_cast %113 : vector<32x128xf32> to vector<1x32x128xf32>
    tpu.vector_store %arg14[%c0_44, %c0_45, %c0_46], %116 {strides = array<i32>} : memref<1x32x128xf32, #tpu.memory_space<vmem>>, vector<1x32x128xf32>,
    return
  }
  func.func @transform_0(%arg0: i32) -> (i32, i32, i32) {
    %c0_i32 = arith.constant 0 : i32
    %c0_i32_0 = arith.constant 0 : i32
    %c0_i32_1 = arith.constant 0 : i32
    return %arg0, %c0_i32, %c0_i32_0 : i32, i32, i32
  }
  func.func @transform_1(%arg0: i32) -> (i32, i32, i32) {
    %c0_i32 = arith.constant 0 : i32
    %c0_i32_0 = arith.constant 0 : i32
    %c0_i32_1 = arith.constant 0 : i32
    return %arg0, %c0_i32, %c0_i32_0 : i32, i32, i32
  }
  func.func @transform_2(%arg0: i32) -> (i32, i32, i32) {
    %c0_i32 = arith.constant 0 : i32
    %c0_i32_0 = arith.constant 0 : i32
    %c0_i32_1 = arith.constant 0 : i32
    return %arg0, %c0_i32, %c0_i32_0 : i32, i32, i32
  }
  func.func @transform_3(%arg0: i32) -> (i32, i32) {
    %c0_i32 = arith.constant 0 : i32
    %c0_i32_0 = arith.constant 0 : i32
    %c0_i32_1 = arith.constant 0 : i32
    return %c0_i32, %c0_i32_0 : i32, i32
  }
  func.func @transform_4(%arg0: i32) -> (i32, i32) {
    %c0_i32 = arith.constant 0 : i32
    %c0_i32_0 = arith.constant 0 : i32
    %c0_i32_1 = arith.constant 0 : i32
    return %c0_i32, %c0_i32_0 : i32, i32
  }
  func.func @transform_5(%arg0: i32) -> (i32, i32) {
    %c0_i32 = arith.constant 0 : i32
    %c0_i32_0 = arith.constant 0 : i32
    %c0_i32_1 = arith.constant 0 : i32
    return %c0_i32, %c0_i32_0 : i32, i32
  }
  func.func @transform_6(%arg0: i32) -> (i32, i32) {
    %c0_i32 = arith.constant 0 : i32
    %c0_i32_0 = arith.constant 0 : i32
    %c0_i32_1 = arith.constant 0 : i32
    return %c0_i32, %c0_i32_0 : i32, i32
  }
  func.func @transform_7(%arg0: i32) -> (i32, i32) {
    %c0_i32 = arith.constant 0 : i32
    %c0_i32_0 = arith.constant 0 : i32
    %c0_i32_1 = arith.constant 0 : i32
    return %c0_i32, %c0_i32_0 : i32, i32
  }
  func.func @transform_8(%arg0: i32) -> (i32, i32) {
    %c0_i32 = arith.constant 0 : i32
    %c0_i32_0 = arith.constant 0 : i32
    %c0_i32_1 = arith.constant 0 : i32
    return %c0_i32, %c0_i32_0 : i32, i32
  }
  func.func @transform_9(%arg0: i32) -> (i32, i32) {
    %c0_i32 = arith.constant 0 : i32
    %c0_i32_0 = arith.constant 0 : i32
    %c0_i32_1 = arith.constant 0 : i32
    return %c0_i32, %c0_i32_0 : i32, i32
  }
  func.func @transform_10(%arg0: i32) -> (i32, i32) {
    %c0_i32 = arith.constant 0 : i32
    %c0_i32_0 = arith.constant 0 : i32
    %c0_i32_1 = arith.constant 0 : i32
    return %c0_i32, %c0_i32_0 : i32, i32
  }
  func.func @transform_11(%arg0: i32) -> (i32, i32) {
    %c0_i32 = arith.constant 0 : i32
    %c0_i32_0 = arith.constant 0 : i32
    %c0_i32_1 = arith.constant 0 : i32
    return %c0_i32, %c0_i32_0 : i32, i32
  }
  func.func @transform_12(%arg0: i32) -> (i32, i32) {
    %c0_i32 = arith.constant 0 : i32
    %c0_i32_0 = arith.constant 0 : i32
    %c0_i32_1 = arith.constant 0 : i32
    return %c0_i32, %c0_i32_0 : i32, i32
  }
  func.func @transform_13(%arg0: i32) -> (i32, i32, i32) {
    %c0_i32 = arith.constant 0 : i32
    %c0_i32_0 = arith.constant 0 : i32
    %c0_i32_1 = arith.constant 0 : i32
    return %arg0, %c0_i32, %c0_i32_0 : i32, i32, i32
  }
}

</mosaic_0001>

<bundles_post_ra>
// kernel: tpu_custom_call.1
= control target key start
LH: loop header
LB: loop body
LE: loop exit
PB: predicated region body
PF: predicated region fallthrough
CT: control target
= control target key end

     0   :  { %18 = vsyncpa [#allocation3], 0  ;;  %s1640_s0 = inlined_call_operand.vmem [shape: f32[2,8,128], index: 0, kind: input, shape index: {}]   ;;  %s1641_s1 = inlined_call_operand.vmem [shape: f32[2,32,1], index: 1, kind: input, shape index: {}]   ;;  %s1642_s2 = inlined_call_operand.vmem [shape: f32[2,32,1], index: 2, kind: input, shape index: {}]   ;;  %s1643_s3 = inlined_call_operand.vmem [shape: bf16[32,8], index: 3, kind: input, shape index: {}]   ;;  %s1644_s4 = inlined_call_operand.vmem [shape: f32[32,1], index: 4, kind: input, shape index: {}]   ;;  %s1645_s5 = inlined_call_operand.vmem [shape: bf16[32,24], index: 5, kind: input, shape index: {}]   ;;  %s1646_s6 = inlined_call_operand.vmem [shape: f32[32,1], index: 6, kind: input, shape index: {}]   ;;  %s1647_s7 = inlined_call_operand.vmem [shape: bf16[32,96], index: 7, kind: input, shape index: {}]   ;;  %s1648_s8 = inlined_call_operand.vmem [shape: f32[32,1], index: 8, kind: input, shape index: {}]   ;;  %s1649_s9 = inlined_call_operand.vmem [shape: bf16[32,96], index: 9, kind: input, shape index: {}]   ;;  %s1650_s10 = inlined_call_operand.vmem [shape: f32[32,1], index: 10, kind: input, shape index: {}]   ;;  %s1651_s11 = inlined_call_operand.vmem [shape: bf16[32,96], index: 11, kind: input, shape index: {}]   ;;  %s1652_s12 = inlined_call_operand.vmem [shape: f32[32,1], index: 12, kind: input, shape index: {}]   ;;  %s1653_s13 = inlined_call_operand.hbm [shape: f32[2,32,128], index: 13, kind: output, shape index: {}]  }
   0x1   :  { %20 = vsyncpa [#allocation3 + $0x1], 0  ;;  %s1410_s25 = smov 0   ;;  %s1412_s26 = smov 0  }
   0x2   :  { %s1414_s27 = smov 0   ;;  %s1416_s28 = smov 0  }
   0x3 LB: > { %1658 = sst [smem:[#allocation5_spill]] %s1323_s27  ;;  %s1431_s29 = sadd.s32 4294967295, %s1327_s28   ;;  %s1327_s28 = sphi %s1416_s28, %s1665_s28   ;;  %s1323_s27 = sphi %s1414_s27, %s1667_s27   ;;  %s1319_s26 = sphi %s1412_s26, %s1669_s26   ;;  %s1315_s25 = sphi %s1410_s25, %s1668_s25  }
   0x4   : > { %s1120_s30 = sadd.s32 4294967294, %s1327_s28   ;;  %s1435_s14 = sadd.s32 1, %s1327_s28  }
   0x5   : > { %1659 = sst [smem:[#allocation6_spill]] %s1435_s14  ;;  %s321_s15 = sadd.s32 1, %s1323_s27 }
   0x6   : > { %s318_s16 = ssub.s32 %s1327_s28, %s1435_s14  ;;  %p331_p0 = scmp.ne.s32.totalorder %s1323_s27, %s1319_s26 }
   0x7   : > { %p319_p1 = scmp.eq.s32.totalorder %s318_s16, 0  ;;  %p332_p2 = scmp.eq.s32.totalorder %s1431_s29, 1 }
   0x8   : > { %p337_p3 = scmp.ne.s32.totalorder %s1319_s26, %s1315_s25  ;;  %p338_p4 = scmp.eq.s32.totalorder %s1120_s30, 1 }
   0x9   : > { %s1446_s17 = scalar_select %p319_p1, %s1323_s27, %s321_s15  }
   0xa   : > { %p1448_p5 = por %p332_p2, %p331_p0  ;;  %p1452_p6 = por %p338_p4, %p337_p3 }
   0xb   : > { %1660 = sst [smem:[#allocation7_spill]] %s1446_s17  ;;  %p1123_p7 = scmp.ge.s32.totalorder %s1327_s28, 1 }
   0xc   : > { %s1662_s19 = scalar_select %p1452_p6, 1, 0 }
   0xd   : > { %p409_p8 = scmp.lt.s32.totalorder %s1327_s28, 3 }
   0xe   : > { %1663 = sst [smem:[#allocation8_spill]] %s1662_s19 }
   0xf   : > { %p410_p9 = pnand %p1123_p7, %p409_p8 }
  0x10   : > { %p462_p10 = scmp.lt.s32.totalorder (!%p410_p9), %s1431_s29, 1  ;;  %s1330_s16 = smov (!%p410_p9), 127  }
  0x11   : > { %413 = sbr.rel (%p410_p9) target bundleno = 1216 (0x4c0), region = 72  ;;  %s1331_s20 = smov (!%p410_p9), 1  }
  0x12   : > { %s1334_s24 = smov (!%p410_p9), 2   ;;  %s1338_s14 = smov (!%p410_p9), 8  }
  0x13   : > { %s459_s21 = sand.u32 (!%p410_p9), 1, %s1319_s26   ;;  %s1205_s19 = sshll.u32 (!%p410_p9), %s1431_s29, 5 }
  0x16   : > { %v579_v0 = vld [vmem:[%s1646_s6 + $0x10] sm:$0xff]  ;;  %v1329_v1 = vmov 0   ;;  %s463_s22 = scalar_select %p462_p10, %s1431_s29, 1  ;;  %v580_v5 = vld [vmem:[%s1646_s6 + $0x18] sm:$0xff]  ;;  %v578_v6 = vld [vmem:[%s1646_s6 + $0x8] sm:$0xff]  ;;  %v486_v9 = vlaneseq  ;;  %v1332_v14 = vmov 0.0  }
  0x17   : > { %1262 = vset.pattern.permute.xlu1 %v1329_v1  ;;  %1263 = vset.pattern.permute.xlu2 %v1329_v1  ;;  %v577_v8 = vld [vmem:[%s1646_s6] sm:$0xff]  ;;  %vm534_vm1 = vcmask 1043456   ;;  %vm611_vm3 = vcmask 195584   ;;  %v1198_v29 = vld [vmem:[%s1645_s5 + $0x8] sm:$0xff]  ;;  %vm770_vm6 = vcmask 785408   ;;  %vm527_vm9 = vcmask 64512  }
  0x18   : > { %593 = vperm.xlu1 %1262, %v579_v0   ;;  %1264 = vset.pattern.permute.xlu0 %v1329_v1  ;;  %s1125_s23 = sshll.u32 %s463_s22, 3  ;;  %s1193_s27 = sshll.u32 %s463_s22, 5  ;;  %v1488_v12 = vand.u32 127, %v486_v9  ;;  %v1197_v27 = vld [vmem:[%s1645_s5] sm:$0xff] }
  0x19   : > { %s465_s15 = scalar_lea.vmem %s1640_s0, %s1125_s23  ;;  %s470_s30 = scalar_lea.vmem %s1641_s1, %s1193_s27 }
  0x1a   : > { %v1466_v2 = vld [vmem:[%s465_s15] sm:$0xff]  ;;  %v480_v7 = vld [vmem:[%s470_s30 + $0x10] sm:$0xff]  ;;  %v481_v11 = vld [vmem:[%s470_s30 + $0x18] sm:$0xff]  ;;  %vm562_vm0 = vcmp.lt.s32.totalorder %v1488_v12, 127  ;;  %vm559_vm2 = vcmp.ge.s32.totalorder %v1488_v12, 1  ;;  %s1333_s23 = smov 126  }
  0x1b   : > { %v557_v3 = vmul.f32 0.2, %v1466_v2  ;;  %652 = vperm.xlu2 %1263, %v480_v7   ;;  %v1141_v15 = vsel %vm562_vm0, 1.0, %v1332_v14  ;;  %v479_v18 = vld [vmem:[%s470_s30 + $0x8] sm:$0xff]  ;;  %v1140_v22 = vsel %vm559_vm2, 1.0, %v1332_v14  ;;  %v478_v23 = vld [vmem:[%s470_s30] sm:$0xff] }
  0x1c   : > { %v739_v7 = vld [vmem:[%s1648_s8 + $0x18] sm:$0xff]  ;;  %vm699_vm4 = vcmp.lt.s32.totalorder %v1488_v12, 126  ;;  %vm696_vm5 = vcmp.ge.s32.totalorder %v1488_v12, 2  ;;  %s1335_s30 = smov 124   ;;  %s1336_s15 = smov 4   ;;  %vm807_vm7 = vcmp.lt.s32.totalorder %v1488_v12, 124 }
  0x1d   : > { %v558_v4 = vmax.f32 %v1466_v2, %v557_v3  ;;  %vm804_vm8 = vcmp.ge.s32.totalorder %v1488_v12, 4  ;;  %vm914_vm10 = vcmp.lt.s32.totalorder %v1488_v12, 120  ;;  %vm911_vm11 = vcmp.ge.s32.totalorder %v1488_v12, 8  ;;  %v1203_v12 = vld [vmem:[%s1651_s11] sm:$0xff]  ;;  %s1019_s29 = scalar_lea.sflag [#allocation3], %s459_s21 }
  0x1f   : > { %568 = vrot.lane.b32.xlu0 %v558_v4, %s1330_s16 }
  0x20   : > { %598 = vperm.xlu1 %1262, %v580_v5   ;;  %v738_v5 = vld [vmem:[%s1648_s8 + $0x10] sm:$0xff] }
  0x23   : > { %657 = vperm.xlu2 %1263, %v481_v11  }
  0x27   : > { %565 = vrot.lane.b32.xlu0 %v558_v4, %s1331_s20  ;;  %s1482_s20 = scalar_lea.vmem %s1642_s2, %s1193_s27  ;;  %s1337_s27 = smov 120  }
  0x28   : > { %588 = vperm.xlu1 %1262, %v578_v6   ;;  %v485_v10 = vld [vmem:[%s1482_s20 + $0x18] sm:$0xff]  ;;  %v482_v13 = vld [vmem:[%s1482_s20] sm:$0xff]  ;;  %v484_v17 = vld [vmem:[%s1482_s20 + $0x10] sm:$0xff] }
  0x29   : > { %v483_v28 = vld [vmem:[%s1482_s20 + $0x8] sm:$0xff] }
  0x2a   : > { %v737_v6 = vld [vmem:[%s1648_s8 + $0x8] sm:$0xff] }
  0x2b   : > { %676 = vperm.xlu2 %1263, %v484_v17  }
  0x2f   : > { %583 = vperm.xlu0 %1264, %v577_v8   ;;  %v736_v8 = vld [vmem:[%s1648_s8] sm:$0xff] }
  0x30   : > { %681 = vperm.xlu1 %1262, %v485_v10   ;;  %v1153_v10 = vsel %vm699_vm4, 1.0, %v1332_v14 }
  0x33   : > { %642 = vperm.xlu2 %1263, %v478_v23   ;;  %v1152_v23 = vsel %vm696_vm5, 1.0, %v1332_v14 }
  0x37   : > { %647 = vperm.xlu0 %1264, %v479_v18  }
  0x38   : > { %666 = vperm.xlu1 %1262, %v482_v13  }
  0x3b   : > { %671 = vperm.xlu2 %1263, %v483_v28  }
  0x75   : > { %v653_v31 = vpop.permute.xlu2 %652 }
  0x7d   : > { %v658_v33 = vpop.permute.xlu2 %657 }
  0x85   : > { %v677_v35 = vpop.permute.xlu2 %676 }
  0x8a   : > { %v594_v30 = vpop.permute.xlu1 %593 }
  0x8d   : > { %v643_v40 = vpop.permute.xlu2 %642 }
  0x91   : > { %v569_v16 = vpop.permute.xlu0 %568 }
  0x92   : > { %v570_v19 = vmul.f32 %v1141_v15, %v569_v16  ;;  %v599_v32 = vpop.permute.xlu1 %598 }
  0x94   : > { %v572_v20 = vpack.c.bf16 %v570_v19, %v570_v19 }
  0x95   : > { %v672_v50 = vpop.permute.xlu2 %671 }
  0x96   : > { %v619_v21 = vsel %vm534_vm1, %v572_v20, 0 }
  0x97   : > { %627 = vmatpush.bf16.msra.mxu1 %v619_v21 }
  0x99   : > { %v566_v24 = vpop.permute.xlu0 %565 }
  0x9a   : > { %v567_v25 = vmul.f32 %v1140_v22, %v566_v24  ;;  %v589_v34 = vpop.permute.xlu1 %588 }
  0x9c   : > { %v571_v26 = vpack.c.bf16 %v558_v4, %v567_v25 }
  0x9e   : > { %628 = vmatpush.bf16.msra.mxu1 %v571_v26 }
  0xa1   : > { %1150 = vmatmul.msk.bf16.vlgmr.msra.gmra.mxu1 %vm611_vm3, %v1197_v27  ;;  %v584_v37 = vpop.permute.xlu0 %583 }
  0xa2   : > { %v682_v36 = vpop.permute.xlu1 %681 }
  0xa9   : > { %v648_v46 = vpop.permute.xlu0 %647 }
  0xaa   : > { %v667_v41 = vpop.permute.xlu1 %666 }
  0xb1   : > { %1151 = vmatmul.msk.bf16.gmra.mxu1 %vm611_vm3, %v1198_v29 }
 0x11e   : > { %v630_v38 = vpop.f32.mrf.mxu1 }
 0x11f   : > { %v631_v39 = vadd.f32 %v630_v38, %v584_v37 }
 0x121   : > { %v660_v42 = vmul.f32 %v643_v40, %v631_v39 }
 0x123   : > { %v684_v43 = vadd.f32 %v667_v41, %v660_v42 }
 0x125   : > { %v688_v44 = vmul.f32 0.2, %v684_v43 }
 0x126   : > { %v632_v45 = vpop.f32.mrf.mxu1 }
 0x127   : > { %v692_v47 = vmax.f32 %v684_v43, %v688_v44  ;;  %v633_v48 = vadd.f32 %v632_v45, %v589_v34  ;;  %v1200_v34 = vld [vmem:[%s1647_s7 + $0x8] sm:$0xff] }
 0x129   : > { %v661_v49 = vmul.f32 %v648_v46, %v633_v48  ;;  %714 = vrot.lane.b32.xlu2 %v692_v47, %s1333_s23 }
 0x12b   : > { %v685_v51 = vadd.f32 %v672_v50, %v661_v49 }
 0x12d   : > { %v689_v52 = vmul.f32 0.2, %v685_v51 }
 0x12e   : > { %v635_v53 = vpop.f32.mrf.mxu1 }
 0x12f   : > { %v636_v54 = vadd.f32 %v635_v53, %v594_v30  ;;  %v693_v55 = vmax.f32 %v685_v51, %v689_v52 }
 0x131   : > { %v662_v56 = vmul.f32 %v653_v31, %v636_v54  ;;  %v728_v57 = vpack.c.bf16 %v693_v55, %v692_v47 }
 0x133   : > { %v686_v58 = vadd.f32 %v677_v35, %v662_v56 }
 0x135   : > { %v690_v59 = vmul.f32 0.2, %v686_v58 }
 0x136   : > { %v637_v60 = vpop.f32.mrf.mxu1 }
 0x137   : > { %v638_v61 = vadd.f32 %v637_v60, %v599_v32  ;;  %v694_v62 = vmax.f32 %v686_v58, %v690_v59  ;;  %v847_v58 = vld [vmem:[%s1650_s10 + $0x18] sm:$0xff]  ;;  %v845_v59 = vld [vmem:[%s1650_s10 + $0x8] sm:$0xff]  ;;  %v844_v60 = vld [vmem:[%s1650_s10] sm:$0xff] }
 0x139   : > { %v663_v63 = vmul.f32 %v658_v33, %v638_v61  ;;  %718 = vrot.lane.b32.xlu0 %v694_v62, %s1333_s23  ;;  %v1199_v33 = vld [vmem:[%s1647_s7] sm:$0xff] }
 0x13b   : > { %v687_v0 = vadd.f32 %v682_v36, %v663_v63 }
 0x13d   : > { %v691_v1 = vmul.f32 0.2, %v687_v0 }
 0x13f   : > { %v695_v3 = vmax.f32 %v687_v0, %v691_v1 }
 0x141   : > { %720 = vrot.lane.b32.xlu1 %v695_v3, %s1333_s23  ;;  %708 = vrot.lane.b32.xlu2 %v695_v3, %s1334_s24  ;;  %v729_v4 = vpack.c.bf16 %v695_v3, %v694_v62 }
 0x142   : > { %716 = vrot.lane.b32.xlu0 %v693_v55, %s1333_s23  ;;  %s1285_s23 = scalar_lea.hbm %s1653_s13, 64 }
 0x149   : > { %706 = vrot.lane.b32.xlu1 %v694_v62, %s1334_s24  ;;  %752 = vperm.xlu2 %1263, %v738_v5   ;;  %v1165_v62 = vsel %vm807_vm7, 1.0, %v1332_v14 }
 0x14a   : > { %702 = vrot.lane.b32.xlu0 %v692_v47, %s1334_s24 }
 0x151   : > { %747 = vperm.xlu2 %1263, %v737_v6   ;;  %704 = vrot.lane.b32.xlu1 %v693_v55, %s1334_s24 }
 0x152   : > { %757 = vperm.xlu0 %1264, %v739_v7  }
 0x159   : > { %742 = vperm.xlu1 %1262, %v736_v8  }
 0x183   : > { %v715_v17 = vpop.permute.xlu2 %714 }
 0x184   : > { %v722_v20 = vmul.f32 %v1153_v10, %v715_v17 }
 0x19b   : > { %v709_v24 = vpop.permute.xlu2 %708 }
 0x19c   : > { %v713_v27 = vmul.f32 %v1152_v23, %v709_v24  ;;  %v1201_v24 = vld [vmem:[%s1649_s9] sm:$0xff] }
 0x1a3   : > { %v753_v35 = vpop.permute.xlu2 %752 }
 0x1ab   : > { %v719_v9 = vpop.permute.xlu0 %718  ;;  %v748_v41 = vpop.permute.xlu2 %747 }
 0x1ac   : > { %v724_v13 = vmul.f32 %v1153_v10, %v719_v9 }
 0x1b3   : > { %v721_v11 = vpop.permute.xlu1 %720 }
 0x1b4   : > { %v725_v15 = vmul.f32 %v1153_v10, %v721_v11  ;;  %v717_v16 = vpop.permute.xlu0 %716  ;;  %v1164_v11 = vsel %vm804_vm8, 1.0, %v1332_v14 }
 0x1b5   : > { %v723_v18 = vmul.f32 %v1153_v10, %v717_v16  ;;  %v492_v10 = vpack.c.bf16 %v1466_v2, %v1466_v2  ;;  %v1195_v16 = vld [vmem:[%s1643_s3] sm:$0xff] }
 0x1b6   : > { %v731_v19 = vpack.c.bf16 %v725_v15, %v724_v13 }
 0x1b7   : > { %v730_v21 = vpack.c.bf16 %v723_v18, %v722_v20  ;;  %v536_v15 = vsel %vm534_vm1, %v492_v10, 0 }
 0x1b8   : > { %779 = vmatpush.bf16.msra.mxu2 %v731_v19  ;;  %545 = vmatpush.bf16.msra.mxu0 %v536_v15 }
 0x1bb   : > { %v707_v22 = vpop.permute.xlu1 %706  ;;  %1138 = vmatmul.msk.bf16.vlgmr.msra.gmra.mxu0 %vm527_vm9, %v1195_v16 }
 0x1bc   : > { %780 = vmatpush.bf16.msra.mxu2 %v730_v21  ;;  %v712_v25 = vmul.f32 %v1152_v23, %v707_v22  ;;  %v703_v28 = vpop.permute.xlu0 %702 }
 0x1bd   : > { %v710_v31 = vmul.f32 %v1152_v23, %v703_v28 }
 0x1be   : > { %v727_v30 = vpack.c.bf16 %v713_v27, %v712_v25  ;;  %v1202_v25 = vld [vmem:[%s1649_s9 + $0x8] sm:$0xff] }
 0x1c0   : > { %781 = vmatpush.bf16.msra.mxu2 %v729_v4 }
 0x1c3   : > { %v705_v26 = vpop.permute.xlu1 %704 }
 0x1c4   : > { %782 = vmatpush.bf16.msra.mxu2 %v728_v57  ;;  %v711_v29 = vmul.f32 %v1152_v23, %v705_v26  ;;  %v758_v51 = vpop.permute.xlu0 %757  ;;  %v846_v57 = vld [vmem:[%s1650_s10 + $0x10] sm:$0xff]  ;;  %v1196_v26 = vld [vmem:[%s1643_s3 + $0x8] sm:$0xff] }
 0x1c6   : > { %v726_v32 = vpack.c.bf16 %v711_v29, %v710_v31 }
 0x1c8   : > { %783 = vmatpush.bf16.msra.mxu2 %v727_v30 }
 0x1cb   : > { %v743_v36 = vpop.permute.xlu1 %742  ;;  %1139 = vmatmul.msk.bf16.gmra.mxu0 %vm527_vm9, %v1196_v26 }
 0x1cc   : > { %784 = vmatpush.bf16.msra.mxu2 %v726_v32 }
 0x1cf   : > { %1162 = vmatmul.msk.bf16.vlgmr.msra.gmra.mxu2 %vm770_vm6, %v1199_v33 }
 0x1df   : > { %1163 = vmatmul.msk.bf16.gmra.mxu2 %vm770_vm6, %v1200_v34 }
 0x252   : > { %v786_v37 = vpop.f32.mrf.mxu2 }
 0x253   : > { %v787_v38 = vadd.f32 %v786_v37, %v743_v36 }
 0x255   : > { %v796_v39 = vmul.f32 0.2, %v787_v38 }
 0x257   : > { %v800_v40 = vmax.f32 %v787_v38, %v796_v39 }
 0x259   : > { %822 = vrot.lane.b32.xlu2 %v800_v40, %s1335_s30 }
 0x25a   : > { %v788_v42 = vpop.f32.mrf.mxu2 }
 0x25b   : > { %v789_v43 = vadd.f32 %v788_v42, %v748_v41 }
 0x25d   : > { %v797_v44 = vmul.f32 0.2, %v789_v43 }
 0x25f   : > { %v801_v45 = vmax.f32 %v789_v43, %v797_v44 }
 0x261   : > { %v836_v46 = vpack.c.bf16 %v801_v45, %v800_v40 }
 0x262   : > { %v791_v47 = vpop.f32.mrf.mxu2 }
 0x263   : > { %v792_v48 = vadd.f32 %v791_v47, %v753_v35 }
 0x265   : > { %v798_v49 = vmul.f32 0.2, %v792_v48 }
 0x267   : > { %v802_v50 = vmax.f32 %v792_v48, %v798_v49  ;;  %v493_v49 = vld [vmem:[%s1644_s4] sm:$0xff] }
 0x269   : > { %826 = vrot.lane.b32.xlu0 %v802_v50, %s1335_s30 }
 0x26a   : > { %v793_v52 = vpop.f32.mrf.mxu2 }
 0x26b   : > { %v794_v53 = vadd.f32 %v793_v52, %v758_v51  ;;  %v496_v51 = vld [vmem:[%s1644_s4 + $0x18] sm:$0xff]  ;;  %v951_v52 = vld [vmem:[%s1652_s12] sm:$0xff] }
 0x26d   : > { %v799_v54 = vmul.f32 0.2, %v794_v53 }
 0x26f   : > { %v803_v55 = vmax.f32 %v794_v53, %v799_v54  ;;  %v953_v53 = vld [vmem:[%s1652_s12 + $0x10] sm:$0xff] }
 0x270   : > { %v495_v54 = vld [vmem:[%s1644_s4 + $0x10] sm:$0xff] }
 0x271   : > { %824 = vrot.lane.b32.xlu0 %v801_v45, %s1335_s30  ;;  %816 = vrot.lane.b32.xlu2 %v803_v55, %s1336_s15  ;;  %v837_v56 = vpack.c.bf16 %v803_v55, %v802_v50 }
 0x272   : > { %828 = vrot.lane.b32.xlu1 %v803_v55, %s1335_s30  ;;  %v954_v55 = vld [vmem:[%s1652_s12 + $0x18] sm:$0xff]  ;;  %s1030_s30 = scalar_lea.hbm %s1653_s13, %s1205_s19 }
 0x273   : > { %s1033_s16 = sshll.u32 %s1030_s30, 4  ;;  %s1034_s16 = int_to_ptr.hbm [resolvable:$true] %s1033_s16 }
 0x274   : > { %s1279_s20 = sshra.s32 %s1034_s16, 4  ;;  %s1280_s20 = int_to_ptr.hbm [resolvable:$true] %s1279_s20 }
 0x275   : > { %s1281_s17 = scalar_lea.hbm %s1280_s20, 32  ;;  %p1286_p0 = scmp.lt.s32.totalorder %s1280_s20, %s1653_s13 }
 0x276   : > { %p1282_p11 = scmp.ne.s32.totalorder %s1280_s20, %s1281_s17  ;;  %p1287_p1 = scmp.lt.s32.totalorder %s1285_s23, %s1281_s17 }
 0x278   : > { %p1283_p12 = pnand %p1282_p11, %p1448_p5  ;;  %p1288_p2 = por %p1287_p1, %p1286_p0 }
 0x279   : > { %810 = vrot.lane.b32.xlu0 %v800_v40, %s1336_s15  ;;  %860 = vperm.xlu2 %1263, %v846_v57  }
 0x27a   : > { %814 = vrot.lane.b32.xlu1 %v802_v50, %s1336_s15  ;;  %v494_v50 = vld [vmem:[%s1644_s4 + $0x8] sm:$0xff]  ;;  %p1284_p13 = pneg %p1283_p12 }
 0x27c   : > { %p1289_p3 = pnand %p1288_p2, %p1284_p13 }
 0x281   : > { %865 = vperm.xlu0 %1264, %v847_v58   ;;  %855 = vperm.xlu2 %1263, %v845_v59   ;;  %v1177_v58 = vsel %vm914_vm10, 1.0, %v1332_v14 }
 0x282   : > { %812 = vrot.lane.b32.xlu1 %v801_v45, %s1336_s15 }
 0x28a   : > { %850 = vperm.xlu1 %1262, %v844_v60  }
 0x2b3   : > { %v823_v4 = vpop.permute.xlu2 %822 }
 0x2b4   : > { %v830_v7 = vmul.f32 %v1165_v62, %v823_v4 }
 0x2cb   : > { %v817_v13 = vpop.permute.xlu2 %816 }
 0x2cc   : > { %v821_v19 = vmul.f32 %v1164_v11, %v817_v13 }
 0x2d3   : > { %v861_v27 = vpop.permute.xlu2 %860 }
 0x2db   : > { %v827_v61 = vpop.permute.xlu0 %826  ;;  %v856_v33 = vpop.permute.xlu2 %855 }
 0x2dc   : > { %v832_v1 = vmul.f32 %v1165_v62, %v827_v61 }
 0x2e3   : > { %v825_v0 = vpop.permute.xlu0 %824 }
 0x2e4   : > { %v829_v63 = vpop.permute.xlu1 %828  ;;  %v831_v5 = vmul.f32 %v1165_v62, %v825_v0 }
 0x2e5   : > { %v833_v3 = vmul.f32 %v1165_v62, %v829_v63 }
 0x2e6   : > { %v838_v8 = vpack.c.bf16 %v831_v5, %v830_v7 }
 0x2e7   : > { %v839_v6 = vpack.c.bf16 %v833_v3, %v832_v1 }
 0x2e9   : > { %886 = vmatpush.bf16.msra.mxu3 %v839_v6  ;;  %v1176_v6 = vsel %vm911_vm11, 1.0, %v1332_v14  ;;  %v1204_v14 = vld [vmem:[%s1651_s11 + $0x8] sm:$0xff] }
 0x2eb   : > { %v811_v20 = vpop.permute.xlu0 %810 }
 0x2ec   : > { %v815_v9 = vpop.permute.xlu1 %814  ;;  %v818_v22 = vmul.f32 %v1164_v11, %v811_v20 }
 0x2ed   : > { %887 = vmatpush.bf16.msra.mxu3 %v838_v8  ;;  %v820_v17 = vmul.f32 %v1164_v11, %v815_v9 }
 0x2ef   : > { %v835_v21 = vpack.c.bf16 %v821_v19, %v820_v17 }
 0x2f1   : > { %888 = vmatpush.bf16.msra.mxu3 %v837_v56  ;;  %v952_v56 = vld [vmem:[%s1652_s12 + $0x8] sm:$0xff] }
 0x2f3   : > { %v866_v43 = vpop.permute.xlu0 %865 }
 0x2f4   : > { %v813_v18 = vpop.permute.xlu1 %812 }
 0x2f5   : > { %889 = vmatpush.bf16.msra.mxu3 %v836_v46  ;;  %v819_v2 = vmul.f32 %v1164_v11, %v813_v18  ;;  %v547_v18 = vpop.f32.mrf.mxu0 }
 0x2f7   : > { %v834_v23 = vpack.c.bf16 %v819_v2, %v818_v22 }
 0x2f9   : > { %890 = vmatpush.bf16.msra.mxu3 %v835_v21 }
 0x2fc   : > { %v851_v28 = vpop.permute.xlu1 %850 }
 0x2fd   : > { %891 = vmatpush.bf16.msra.mxu3 %v834_v23  ;;  %v549_v19 = vpop.f32.mrf.mxu0 }
 0x300   : > { %1174 = vmatmul.msk.bf16.vlgmr.msra.gmra.mxu3 %vm770_vm6, %v1201_v24 }
 0x305   : > { %v552_v2 = vpop.f32.mrf.mxu0 }
 0x30d   : > { %v554_v23 = vpop.f32.mrf.mxu0 }
 0x310   : > { %1175 = vmatmul.msk.bf16.gmra.mxu3 %vm770_vm6, %v1202_v25 }
 0x383   : > { %v893_v29 = vpop.f32.mrf.mxu3 }
 0x384   : > { %v894_v30 = vadd.f32 %v893_v29, %v851_v28 }
 0x386   : > { %v903_v31 = vmul.f32 0.2, %v894_v30 }
 0x388   : > { %v907_v32 = vmax.f32 %v894_v30, %v903_v31 }
 0x38a   : > { %929 = vrot.lane.b32.xlu2 %v907_v32, %s1337_s27 }
 0x38b   : > { %v895_v34 = vpop.f32.mrf.mxu3 }
 0x38c   : > { %v896_v35 = vadd.f32 %v895_v34, %v856_v33 }
 0x38e   : > { %v904_v36 = vmul.f32 0.2, %v896_v35 }
 0x390   : > { %v908_v37 = vmax.f32 %v896_v35, %v904_v36 }
 0x392   : > { %v943_v38 = vpack.c.bf16 %v908_v37, %v907_v32 }
 0x393   : > { %v898_v39 = vpop.f32.mrf.mxu3 }
 0x394   : > { %v899_v40 = vadd.f32 %v898_v39, %v861_v27 }
 0x396   : > { %v905_v41 = vmul.f32 0.2, %v899_v40 }
 0x398   : > { %v909_v42 = vmax.f32 %v899_v40, %v905_v41 }
 0x39a   : > { %933 = vrot.lane.b32.xlu0 %v909_v42, %s1337_s27 }
 0x39b   : > { %v900_v44 = vpop.f32.mrf.mxu3 }
 0x39c   : > { %v901_v45 = vadd.f32 %v900_v44, %v866_v43 }
 0x39e   : > { %v906_v46 = vmul.f32 0.2, %v901_v45 }
 0x3a0   : > { %v910_v47 = vmax.f32 %v901_v45, %v906_v46 }
 0x3a2   : > { %931 = vrot.lane.b32.xlu0 %v908_v37, %s1337_s27  ;;  %923 = vrot.lane.b32.xlu2 %v910_v47, %s1338_s14  ;;  %v944_v48 = vpack.c.bf16 %v910_v47, %v909_v42 }
 0x3a3   : > { %935 = vrot.lane.b32.xlu1 %v910_v47, %s1337_s27  ;;  %s1124_s27 = sshll.u32 %s459_s21, 5 }
 0x3a4   : > { %s461_s22 = scalar_lea.vmem [#allocation2], %s1124_s27 }
 0x3a5   : > { %s1031_s15 = sshll.u32 %s461_s22, 4  ;;  %s1032_s15 = int_to_ptr.vmem [resolvable:$true] %s1031_s15 }
 0x3aa   : > { %917 = vrot.lane.b32.xlu0 %v907_v32, %s1338_s14  ;;  %499 = vperm.xlu2 %1263, %v493_v49  }
 0x3ab   : > { %921 = vrot.lane.b32.xlu1 %v909_v42, %s1338_s14 }
 0x3b2   : > { %504 = vperm.xlu0 %1264, %v494_v50   ;;  %514 = vperm.xlu2 %1263, %v496_v51  }
 0x3b3   : > { %919 = vrot.lane.b32.xlu1 %v908_v37, %s1338_s14 }
 0x3ba   : > { %957 = vperm.xlu0 %1264, %v951_v52   ;;  %967 = vperm.xlu2 %1263, %v953_v53  }
 0x3bb   : > { %509 = vperm.xlu1 %1262, %v495_v54  }
 0x3c2   : > { %972 = vperm.xlu0 %1264, %v954_v55  }
 0x3c3   : > { %962 = vperm.xlu1 %1262, %v952_v56  }
 0x3e4   : > { %v930_v63 = vpop.permute.xlu2 %929 }
 0x3e5   : > { %v937_v3 = vmul.f32 %v1177_v58, %v930_v63 }
 0x3fc   : > { %v924_v7 = vpop.permute.xlu2 %923 }
 0x3fd   : > { %v928_v10 = vmul.f32 %v1176_v6, %v924_v7 }
 0x404   : > { %v500_v20 = vpop.permute.xlu2 %499 }
 0x405   : > { %v548_v29 = vadd.f32 %v547_v18, %v500_v20 }
 0x40c   : > { %v934_v57 = vpop.permute.xlu0 %933  ;;  %v515_v22 = vpop.permute.xlu2 %514 }
 0x40d   : > { %v939_v61 = vmul.f32 %v1177_v58, %v934_v57  ;;  %v555_v39 = vadd.f32 %v554_v23, %v515_v22 }
 0x414   : > { %v932_v60 = vpop.permute.xlu0 %931  ;;  %v968_v26 = vpop.permute.xlu2 %967 }
 0x415   : > { %v936_v59 = vpop.permute.xlu1 %935  ;;  %v938_v0 = vmul.f32 %v1177_v58, %v932_v60 }
 0x416   : > { %v940_v62 = vmul.f32 %v1177_v58, %v936_v59 }
 0x417   : > { %v945_v4 = vpack.c.bf16 %v938_v0, %v937_v3 }
 0x418   : > { %v946_v1 = vpack.c.bf16 %v940_v62, %v939_v61 }
 0x41a   : > { %993 = vmatpush.bf16.msrb.mxu0 %v946_v1  ;;  %1206 = vmatpush.bf16.msrb.mxu1 %v946_v1 }
 0x41c   : > { %v918_v11 = vpop.permute.xlu0 %917 }
 0x41d   : > { %v922_v5 = vpop.permute.xlu1 %921  ;;  %v925_v16 = vmul.f32 %v1176_v6, %v918_v11 }
 0x41e   : > { %994 = vmatpush.bf16.msrb.mxu0 %v945_v4  ;;  %1207 = vmatpush.bf16.msrb.mxu1 %v945_v4  ;;  %v927_v8 = vmul.f32 %v1176_v6, %v922_v5 }
 0x420   : > { %v942_v15 = vpack.c.bf16 %v928_v10, %v927_v8 }
 0x422   : > { %995 = vmatpush.bf16.msrb.mxu0 %v944_v48  ;;  %1208 = vmatpush.bf16.msrb.mxu1 %v944_v48 }
 0x424   : > { %v505_v21 = vpop.permute.xlu0 %504 }
 0x425   : > { %v920_v9 = vpop.permute.xlu1 %919  ;;  %v550_v40 = vadd.f32 %v549_v19, %v505_v21 }
 0x426   : > { %996 = vmatpush.bf16.msrb.mxu0 %v943_v38  ;;  %1209 = vmatpush.bf16.msrb.mxu1 %v943_v38  ;;  %v926_v13 = vmul.f32 %v1176_v6, %v920_v9 }
 0x428   : > { %v941_v17 = vpack.c.bf16 %v926_v13, %v925_v16 }
 0x42a   : > { %997 = vmatpush.bf16.msrb.mxu0 %v942_v15  ;;  %1210 = vmatpush.bf16.msrb.mxu1 %v942_v15 }
 0x42c   : > { %v958_v25 = vpop.permute.xlu0 %957 }
 0x42d   : > { %v510_v24 = vpop.permute.xlu1 %509 }
 0x42e   : > { %998 = vmatpush.bf16.msrb.mxu0 %v941_v17  ;;  %1211 = vmatpush.bf16.msrb.mxu1 %v941_v17  ;;  %v553_v30 = vadd.f32 %v552_v2, %v510_v24 }
 0x431   : > { %1186 = vmatmul.msk.bf16.vlgmr.msrb.gmra.mxu0 %vm770_vm6, %v1203_v12  ;;  %1187 = vmatmul.msk.bf16.vlgmr.msrb.gmra.mxu1 %vm770_vm6, %v1204_v14 }
 0x434   : > { %v973_v36 = vpop.permute.xlu0 %972 }
 0x435   : > { %v963_v35 = vpop.permute.xlu1 %962 }
 0x4ae   : > { %v1000_v27 = vpop.f32.mrf.mxu0  ;;  %v1005_v28 = vpop.f32.mrf.mxu1 }
 0x4af   : > { %v1001_v31 = vadd.f32 %v1000_v27, %v958_v25  ;;  %v1006_v32 = vadd.f32 %v1005_v28, %v968_v26 }
 0x4b1   : > { %v1010_v33 = vadd.f32 %v1001_v31, %v548_v29  ;;  %v1012_v34 = vadd.f32 %v1006_v32, %v553_v30 }
 0x4b3   : > { %1014 = vst [vmem:[%s461_s22] sm:$0xff] %v1010_v33 }
 0x4b4   : > { %1016 = vst [vmem:[%s461_s22 + $0x10] sm:$0xff] %v1012_v34 }
 0x4b6   : > { %v1002_v37 = vpop.f32.mrf.mxu0  ;;  %v1007_v38 = vpop.f32.mrf.mxu1 }
 0x4b7   : > { %v1003_v41 = vadd.f32 %v1002_v37, %v963_v35  ;;  %v1008_v42 = vadd.f32 %v1007_v38, %v973_v36 }
 0x4b9   : > { %v1011_v43 = vadd.f32 %v1003_v41, %v550_v40  ;;  %v1013_v44 = vadd.f32 %v1008_v42, %v555_v39 }
 0x4bb   : > { %1015 = vst [vmem:[%s461_s22 + $0x8] sm:$0xff] %v1011_v43 }
 0x4bc   : > { %1017 = vst [vmem:[%s461_s22 + $0x18] sm:$0xff] %v1013_v44 }
 0x4bd   : > { %1292 = shalt.err (!%p1289_p3)
}
 0x4be   : > { %s1339_s21 = smov 128  }
 0x4bf   : > { %1212 = dma.vmem_to_hbm [thread:$0]  (%p1448_p5), %s1032_s15, 512, %s1034_s16, %s1019_s29, %s1339_s21, %s1339_s21, %s1338_s14  }
 0x4c0 PF: > { %p1218_p4 = scmp.ge.s32.totalorder %s1327_s28, 2  ;;  %s1048_s27 = sand.u32 1, %s1315_s25  }
 0x4c1   : > { %s1049_s19 = scalar_lea.sflag [#allocation3], %s1048_s27 }
 0x4c2   : > { %p1215_p7 = pnand %p1218_p4, %p1452_p6 }
 0x4c4   : > { %p1216_p8 = pneg %p1215_p7 }
 0x4c6   : > { %1310 = dma.done.wait (%p1216_p8), %s1049_s19, 512  }
 0x4c7   : > { %1312 = vsyncadd (%p1216_p8), %s1049_s19, 4294966784  ;;  %s1665_s28 = sld [smem:[#allocation6_spill]]  ;;  %s1668_s25 = smov %s1319_s26 }
 0x4c8   : > { %s1666_s20 = sld [smem:[#allocation5_spill]] }
 0x4c9   : > { %s1667_s27 = sld [smem:[#allocation7_spill]] }
 0x4cd   : > { %p23_p9 = scmp.ge.s32.totalorder %s1665_s28, 4  }
 0x4ce   : > { %s1669_s26 = smov %s1666_s20 }
 0x4cf   :  { %25 = sbr.rel (!%p23_p9) target bundleno = 3 (0x3), region = 113 }
 0x4d4   :  { %1055 = vsyncpa [#allocation3], 1 }
 0x4d5   :  { %1057 = vsyncpa [#allocation3 + $0x1], 1 }

</bundles_post_ra>
